<compile_context>
chip_gen: v5e
topology: v5e:2x2
jax: 0.10.0
libtpu: 0.0.40
codegen_flags: <defaults>
</compile_context>

<pallas_src>
import functools

import jax
import jax.numpy as jnp
from jax import lax
from jax.experimental import pallas as pl
from jax.experimental.pallas import tpu as pltpu


def _default_compute_dtype():
    """bf16 MXU operands only pay off on chips with bf16 VPU lanes (v6e and newer)."""
    try:
        kind = jax.devices()[0].device_kind.lower()
    except Exception:
        return jnp.float32
    if any(tag in kind for tag in ("v6", "v7", "tpu7")):
        return jnp.bfloat16
    return jnp.float32


def _pick_tile(hw, cap):
    """Largest multiple of 128 that divides hw (hw already a multiple of 128), <= cap."""
    t = max(128, min(cap, hw))
    t -= t % 128
    while hw % t != 0:
        t -= 128
    return max(t, 128)


def _resample_kernel(tgt_ref, img_ref, out_ref, *, H, W, compute_dtype):
    # tgt_ref: (1, 2, TM)   source coords (x then y) = dest pixel + pixel flow (unclamped)
    # img_ref: (1, C*H, W)  whole image for this batch element, resident in VMEM
    # out_ref: (1, C, TM)   lane-dense output tile
    C = out_ref.shape[1]
    TM = out_ref.shape[2]
    CH = img_ref.shape[1]

    t = tgt_ref[0].astype(jnp.float32)                       # (2, TM)
    # border padding: clamp the source coordinate into the valid range
    x = jnp.clip(t[0:1, :], 0.0, float(W - 1))
    y = jnp.clip(t[1:2, :], 0.0, float(H - 1))

    x0 = jnp.floor(x)
    y0 = jnp.floor(y)
    dx = x - x0                                              # (1, TM) in [0, 1)
    dy = y - y0
    x0i = x0.astype(jnp.int32)
    y0i = y0.astype(jnp.int32)

    # ---- stage 1: horizontal interpolation — one MXU matmul over W -----------------
    # S_x[j, p] = (1-dx_p)*[j == x0_p] + dx_p*[j == x0_p + 1].  At the right border
    # dx == 0, so the dropped x0+1 column carries zero weight (duplicate-corner safe).
    d_col = lax.broadcasted_iota(jnp.int32, (W, TM), 0) - x0i
    s_x = jnp.where(d_col == 0, 1.0 - dx, jnp.where(d_col == 1, dx, 0.0))
    tmp = jnp.dot(img_ref[0], s_x.astype(compute_dtype),
                  preferred_element_type=jnp.float32)        # (C*H, TM) f32

    # ---- stage 2: vertical pick — f32 weights keep the partition of unity exact ----
    d_row = lax.broadcasted_iota(jnp.int32, (H, TM), 0) - y0i
    s_y_blk = jnp.where(d_row == 0, 1.0 - dy, jnp.where(d_row == 1, dy, 0.0))  # (H, TM)
    s_y = jnp.concatenate([s_y_blk] * C, axis=0)             # (C*H, TM), per-channel copy
    tmp = tmp * s_y

    # Sum each channel's H rows with a tiny constant 0/1 matmul (keeps values 2-D,
    # no sublane-splitting reshapes, works for any H).
    r_idx = lax.broadcasted_iota(jnp.int32, (C, CH), 1)
    c_idx = lax.broadcasted_iota(jnp.int32, (C, CH), 0)
    reduce_mat = ((r_idx >= c_idx * H) & (r_idx < (c_idx + 1) * H)).astype(jnp.float32)
    out_ref[0] = jnp.dot(reduce_mat, tmp,
                         preferred_element_type=jnp.float32).astype(out_ref.dtype)


def resample(image_nchw, flow, *, compute_dtype=None, tm=512):
    """Pallas equivalent of BaseModel.resample(image, flow).

    image_nchw: (B, C, H, W) float32
    flow:       (B, 2, H, W) float32, pixel-space flow (x then y)
    returns:    (B, C, H, W) float32
    """
    B, C, H, W = image_nchw.shape
    assert flow.shape == (B, 2, H, W)
    HW = H * W
    if compute_dtype is None:
        compute_dtype = _default_compute_dtype()

    # Lane-dense output axis: pad HW up to a multiple of 128.  Padded lanes sample the
    # clamped pixel (0, 0) — no OOB — and are sliced off below.
    HW_pad = -(-HW // 128) * 128
    TM = _pick_tile(HW_pad, tm)
    # Megacore (v7x has 2 TensorCores): make sure there are >= 2 parallel programs.
    if B * (HW_pad // TM) < 2 and TM % 256 == 0:
        TM //= 2

    # NCHW flattened over (H, W) is already the layout we need — reshapes only.
    img2d = image_nchw.reshape(B, C * H, W).astype(compute_dtype)

    # Precompute source coords = dest pixel + flow (the get_grid normalization and the
    # align_corners=True un-normalization in grid_sample cancel exactly).
    col = jnp.arange(W, dtype=jnp.float32).reshape(1, 1, W)
    row = jnp.arange(H, dtype=jnp.float32).reshape(1, H, 1)
    tgt = jnp.stack([col + flow[:, 0], row + flow[:, 1]], axis=1).reshape(B, 2, HW)
    if HW_pad != HW:
        tgt = jnp.pad(tgt, ((0, 0), (0, 0), (0, HW_pad - HW)))

    kernel = functools.partial(_resample_kernel, H=H, W=W, compute_dtype=compute_dtype)

    cost = pl.CostEstimate(
        flops=int(B * HW_pad * (2 * C * H * W + 2 * C * C * H + 6 * (W + H + C * H))),
        transcendentals=0,
        bytes_accessed=int(B * (2 * HW_pad * 4
                                + C * HW * jnp.dtype(compute_dtype).itemsize
                                + C * HW_pad * 4)),
    )

    out = pl.pallas_call(
        kernel,
        out_shape=jax.ShapeDtypeStruct((B, C, HW_pad), image_nchw.dtype),
        grid_spec=pltpu.PrefetchScalarGridSpec(
            num_scalar_prefetch=0,
            grid=(B, HW_pad // TM),
            in_specs=[
                pl.BlockSpec((1, 2, TM), lambda b, m: (b, 0, m)),
                # whole image resident per batch element: fetched once per b, not per m
                pl.BlockSpec((1, C * H, W), lambda b, m: (b, 0, 0)),
            ],
            out_specs=pl.BlockSpec((1, C, TM), lambda b, m: (b, 0, m)),
        ),
        compiler_params=pltpu.CompilerParams(
            dimension_semantics=("parallel", "parallel")),
        cost_estimate=cost,
    )(tgt, img2d)

    return out[:, :, :HW].reshape(B, C, H, W)


def _resample_ref(image, flow):
    """Pure-JAX reference: bilinear sampling, border padding, src = dst + flow."""
    B, C, H, W = image.shape
    ii = jnp.arange(H, dtype=jnp.float32).reshape(1, H, 1)
    jj = jnp.arange(W, dtype=jnp.float32).reshape(1, 1, W)
    x = jnp.clip(jj + flow[:, 0], 0.0, W - 1.0)
    y = jnp.clip(ii + flow[:, 1], 0.0, H - 1.0)
    x0 = jnp.floor(x)
    y0 = jnp.floor(y)
    dx = x - x0
    dy = y - y0
    x0 = x0.astype(jnp.int32)
    y0 = y0.astype(jnp.int32)
    x1 = jnp.minimum(x0 + 1, W - 1)
    y1 = jnp.minimum(y0 + 1, H - 1)
    img = image.reshape(B, C, H * W)

    def gather(yi, xi):
        flat = (yi * W + xi).reshape(B, 1, H * W)
        g = jnp.take_along_axis(img, jnp.broadcast_to(flat, (B, C, H * W)), axis=2)
        return g.reshape(B, C, H, W)

    w_tl = ((1.0 - dy) * (1.0 - dx))[:, None]
    w_tr = ((1.0 - dy) * dx)[:, None]
    w_bl = (dy * (1.0 - dx))[:, None]
    w_br = (dy * dx)[:, None]
    return (w_tl * gather(y0, x0) + w_tr * gather(y0, x1)
            + w_bl * gather(y1, x0) + w_br * gather(y1, x1))


if __name__ == "__main__":
    key = jax.random.PRNGKey(0)
    k_img, k_flow, k_img2, k_flow2 = jax.random.split(key, 4)

    B, C, H, W = 2, 4, 16, 16
    image = jax.random.normal(k_img, (B, C, H, W), dtype=jnp.float32)
    flow = 2.0 * jax.random.normal(k_flow, (B, 2, H, W), dtype=jnp.float32)

    # main run with the hardware-selected compute dtype (bf16 on v6e/v7x, f32 otherwise)
    auto_dtype = _default_compute_dtype()
    out = resample(image, flow)
    jax.block_until_ready(out)
    assert out.shape == (B, C, H, W)

    # f32 kernel path vs pure-JAX reference
    out_f32 = resample(image, flow, compute_dtype=jnp.float32)
    ref = _resample_ref(image, flow)
    jax.block_until_ready((out_f32, ref))
    assert jnp.allclose(out_f32, ref, atol=1e-4, rtol=1e-4), "f32 kernel vs reference mismatch"

    # zero flow must reproduce the input exactly (f32 path)
    out_id = resample(image, jnp.zeros((B, 2, H, W), jnp.float32),
                      compute_dtype=jnp.float32)
    assert jnp.allclose(out_id, image, atol=1e-5), "identity warp mismatch"

    # hardware-selected dtype vs f32 path — tight enough to catch semantic regressions
    # while allowing bf16 operand quantization (weights / accumulation stay f32).
    tol = 5e-2 if auto_dtype == jnp.bfloat16 else 1e-5
    assert jnp.allclose(out, out_f32, atol=tol, rtol=tol), "compute-dtype path mismatch"

    # non-128-multiple spatial size: exercises HW padding, C != 4 and the megacore split
    B2, C2, H2, W2 = 1, 3, 8, 24           # HW = 192 -> padded to 256, grid (1, 2)
    image2 = jax.random.normal(k_img2, (B2, C2, H2, W2), dtype=jnp.float32)
    flow2 = 1.5 * jax.random.normal(k_flow2, (B2, 2, H2, W2), dtype=jnp.float32)
    out2 = resample(image2, flow2, compute_dtype=jnp.float32)
    ref2 = _resample_ref(image2, flow2)
    jax.block_until_ready((out2, ref2))
    assert jnp.allclose(out2, ref2, atol=1e-4, rtol=1e-4), "padded-shape kernel vs reference mismatch"

    print("KERNEL_OK")
</pallas_src>

<mosaic_0001>
module attributes {stable_mosaic.version = 11 : i64} {
  func.func @_resample_kernel(%arg0: i32, %arg1: i32, %arg2: memref<1x2x256xf32, #tpu.memory_space<vmem>>, %arg3: memref<1x64x16xf32, #tpu.memory_space<vmem>>, %arg4: memref<1x4x256xf32, #tpu.memory_space<vmem>>) attributes {dimension_semantics = [#tpu.dimension_semantics<parallel>, #tpu.dimension_semantics<parallel>], iteration_bounds = array<i64: 2, 1>, scalar_prefetch = 0 : i64, scratch_operands = 0 : i64, tpu.core_type = #tpu.core_type<tc>, window_params = [{transform_indices = @transform_0, window_bounds = array<i64: 1, 2, 256>}, {transform_indices = @transform_1, window_bounds = array<i64: 1, 64, 16>}, {transform_indices = @transform_2, window_bounds = array<i64: 1, 4, 256>}]} {
    %c0 = arith.constant 0 : index
    %c0_0 = arith.constant 0 : index
    %c0_1 = arith.constant 0 : index
    %0 = vector.load %arg2[%c0, %c0_0, %c0_1] : memref<1x2x256xf32, #tpu.memory_space<vmem>>, vector<1x2x256xf32>
    %1 = vector.shape_cast %0 : vector<1x2x256xf32> to vector<2x256xf32>
    %2 = vector.extract_strided_slice %1 {offsets = [0, 0], sizes = [1, 256], strides = [1, 1]} : vector<2x256xf32> to vector<1x256xf32>
    %cst = arith.constant 0.000000e+00 : f32
    %cst_2 = arith.constant 1.500000e+01 : f32
    %3 = vector.broadcast %cst : f32 to vector<1x256xf32>
    %4 = arith.maximumf %3, %2 : vector<1x256xf32>
    %5 = vector.broadcast %cst_2 : f32 to vector<1x256xf32>
    %6 = arith.minimumf %5, %4 : vector<1x256xf32>
    %7 = vector.extract_strided_slice %1 {offsets = [1, 0], sizes = [1, 256], strides = [1, 1]} : vector<2x256xf32> to vector<1x256xf32>
    %cst_3 = arith.constant 0.000000e+00 : f32
    %cst_4 = arith.constant 1.500000e+01 : f32
    %8 = vector.broadcast %cst_3 : f32 to vector<1x256xf32>
    %9 = arith.maximumf %8, %7 : vector<1x256xf32>
    %10 = vector.broadcast %cst_4 : f32 to vector<1x256xf32>
    %11 = arith.minimumf %10, %9 : vector<1x256xf32>
    %12 = math.floor %6 : vector<1x256xf32>
    %13 = math.floor %11 : vector<1x256xf32>
    %14 = arith.subf %6, %12 : vector<1x256xf32>
    %15 = arith.subf %11, %13 : vector<1x256xf32>
    %16 = arith.fptosi %12 : vector<1x256xf32> to vector<1x256xi32>
    %17 = arith.fptosi %13 : vector<1x256xf32> to vector<1x256xi32>
    %18 = tpu.iota {dimensions = array<i32: 0>} : vector<16x256xi32>
    %19 = vector.broadcast %16 : vector<1x256xi32> to vector<16x256xi32>
    %20 = arith.subi %18, %19 : vector<16x256xi32>
    %c0_i32 = arith.constant 0 : i32
    %21 = vector.broadcast %c0_i32 : i32 to vector<16x256xi32>
    %22 = arith.cmpi eq, %20, %21 : vector<16x256xi32>
    %cst_5 = arith.constant 1.000000e+00 : f32
    %23 = vector.broadcast %cst_5 : f32 to vector<1x256xf32>
    %24 = arith.subf %23, %14 : vector<1x256xf32>
    %c1_i32 = arith.constant 1 : i32
    %25 = vector.broadcast %c1_i32 : i32 to vector<16x256xi32>
    %26 = arith.cmpi eq, %20, %25 : vector<16x256xi32>
    %cst_6 = arith.constant 0.000000e+00 : f32
    %27 = vector.shape_cast %14 : vector<1x256xf32> to vector<1x256xf32>
    %28 = vector.broadcast %27 : vector<1x256xf32> to vector<16x256xf32>
    %29 = vector.broadcast %cst_6 : f32 to vector<16x256xf32>
    %30 = arith.select %26, %28, %29 : vector<16x256xi1>, vector<16x256xf32>
    %31 = vector.shape_cast %24 : vector<1x256xf32> to vector<1x256xf32>
    %32 = vector.broadcast %31 : vector<1x256xf32> to vector<16x256xf32>
    %33 = arith.select %22, %32, %30 : vector<16x256xi1>, vector<16x256xf32>
    %c0_7 = arith.constant 0 : index
    %c0_8 = arith.constant 0 : index
    %c0_9 = arith.constant 0 : index
    %34 = vector.load %arg3[%c0_7, %c0_8, %c0_9] : memref<1x64x16xf32, #tpu.memory_space<vmem>>, vector<1x64x16xf32>
    %35 = vector.shape_cast %34 : vector<1x64x16xf32> to vector<64x16xf32>
    %cst_10 = arith.constant dense<0.000000e+00> : vector<64x256xf32>
    %36 = tpu.matmul %35, %33, %cst_10 {dimension_numbers = #tpu.dot_dimension_numbers<[1], [0], [0], [1], [0, 0, 1, 1], [], []>} : vector<64x16xf32>, vector<16x256xf32>, vector<64x256xf32> -> vector<64x256xf32>
    %37 = tpu.iota {dimensions = array<i32: 0>} : vector<16x256xi32>
    %38 = vector.broadcast %17 : vector<1x256xi32> to vector<16x256xi32>
    %39 = arith.subi %37, %38 : vector<16x256xi32>
    %c0_i32_11 = arith.constant 0 : i32
    %40 = vector.broadcast %c0_i32_11 : i32 to vector<16x256xi32>
    %41 = arith.cmpi eq, %39, %40 : vector<16x256xi32>
    %cst_12 = arith.constant 1.000000e+00 : f32
    %42 = vector.broadcast %cst_12 : f32 to vector<1x256xf32>
    %43 = arith.subf %42, %15 : vector<1x256xf32>
    %c1_i32_13 = arith.constant 1 : i32
    %44 = vector.broadcast %c1_i32_13 : i32 to vector<16x256xi32>
    %45 = arith.cmpi eq, %39, %44 : vector<16x256xi32>
    %cst_14 = arith.constant 0.000000e+00 : f32
    %46 = vector.shape_cast %15 : vector<1x256xf32> to vector<1x256xf32>
    %47 = vector.broadcast %46 : vector<1x256xf32> to vector<16x256xf32>
    %48 = vector.broadcast %cst_14 : f32 to vector<16x256xf32>
    %49 = arith.select %45, %47, %48 : vector<16x256xi1>, vector<16x256xf32>
    %50 = vector.shape_cast %43 : vector<1x256xf32> to vector<1x256xf32>
    %51 = vector.broadcast %50 : vector<1x256xf32> to vector<16x256xf32>
    %52 = arith.select %41, %51, %49 : vector<16x256xi1>, vector<16x256xf32>
    %53 = tpu.concatenate %52, %52, %52, %52 in 0 : vector<16x256xf32>, vector<16x256xf32>, vector<16x256xf32>, vector<16x256xf32> -> vector<64x256xf32>
    %54 = arith.mulf %36, %53 : vector<64x256xf32>
    %55 = tpu.iota {dimensions = array<i32: 1>} : vector<4x64xi32>
    %56 = tpu.iota {dimensions = array<i32: 0>} : vector<4x64xi32>
    %c16_i32 = arith.constant 16 : i32
    %57 = vector.broadcast %c16_i32 : i32 to vector<4x64xi32>
    %58 = arith.muli %56, %57 : vector<4x64xi32>
    %59 = arith.cmpi sge, %55, %58 : vector<4x64xi32>
    %c1_i32_15 = arith.constant 1 : i32
    %60 = vector.broadcast %c1_i32_15 : i32 to vector<4x64xi32>
    %61 = arith.addi %56, %60 : vector<4x64xi32>
    %c16_i32_16 = arith.constant 16 : i32
    %62 = vector.broadcast %c16_i32_16 : i32 to vector<4x64xi32>
    %63 = arith.muli %61, %62 : vector<4x64xi32>
    %64 = arith.cmpi slt, %55, %63 : vector<4x64xi32>
    %65 = arith.andi %59, %64 : vector<4x64xi1>
    %66 = arith.extui %65 : vector<4x64xi1> to vector<4x64xi32>
    %67 = arith.sitofp %66 : vector<4x64xi32> to vector<4x64xf32>
    %cst_17 = arith.constant dense<0.000000e+00> : vector<4x256xf32>
    %68 = tpu.matmul %67, %54, %cst_17 {dimension_numbers = #tpu.dot_dimension_numbers<[1], [0], [0], [1], [0, 0, 1, 1], [], []>} : vector<4x64xf32>, vector<64x256xf32>, vector<4x256xf32> -> vector<4x256xf32>
    %c0_18 = arith.constant 0 : index
    %c0_19 = arith.constant 0 : index
    %c0_20 = arith.constant 0 : index
    %69 = vector.load %arg4[%c0_18, %c0_19, %c0_20] : memref<1x4x256xf32, #tpu.memory_space<vmem>>, vector<1x4x256xf32>
    %70 = vector.shape_cast %69 : vector<1x4x256xf32> to vector<4x256xf32>
    %71 = vector.shape_cast %68 : vector<4x256xf32> to vector<1x4x256xf32>
    tpu.vector_store %arg4[%c0_18, %c0_19, %c0_20], %71 {strides = array<i32>} : memref<1x4x256xf32, #tpu.memory_space<vmem>>, vector<1x4x256xf32>,
    return
  }
  func.func @transform_0(%arg0: i32, %arg1: i32) -> (i32, i32, i32) {
    %c0_i32 = arith.constant 0 : i32
    %c0_i32_0 = arith.constant 0 : i32
    return %arg0, %c0_i32, %arg1 : i32, i32, i32
  }
  func.func @transform_1(%arg0: i32, %arg1: i32) -> (i32, i32, i32) {
    %c0_i32 = arith.constant 0 : i32
    %c0_i32_0 = arith.constant 0 : i32
    %c0_i32_1 = arith.constant 0 : i32
    return %arg0, %c0_i32, %c0_i32_0 : i32, i32, i32
  }
  func.func @transform_2(%arg0: i32, %arg1: i32) -> (i32, i32, i32) {
    %c0_i32 = arith.constant 0 : i32
    %c0_i32_0 = arith.constant 0 : i32
    return %arg0, %c0_i32, %arg1 : i32, i32, i32
  }
}

</mosaic_0001>

<bundles_post_ra>
// kernel: tpu_custom_call.1
= control target key start
LH: loop header
LB: loop body
LE: loop exit
PB: predicated region body
PF: predicated region fallthrough
CT: control target
= control target key end

     0   :  { %7 = vsyncpa [#allocation3], 0  ;;  %s961_s0 = inlined_call_operand.vmem [shape: f32[2,2,256], index: 0, kind: input, shape index: {}]   ;;  %s962_s1 = inlined_call_operand.vmem [shape: f32[2,64,16], index: 1, kind: input, shape index: {}]   ;;  %s963_s2 = inlined_call_operand.hbm [shape: f32[2,4,256], index: 2, kind: output, shape index: {}]  }
   0x1   :  { %9 = vsyncpa [#allocation3 + $0x1], 0  ;;  %s771_s9 = smov 0   ;;  %s773_s10 = smov 0  }
   0x2   :  { %s775_s11 = smov 0   ;;  %s777_s12 = smov 0  }
   0x3   :  { %s779_s13 = smov 0   ;;  %s781_s14 = smov 0  }
   0x4 LB: > { %s576_s15 = sadd.s32 4294967295, %s753_s14   ;;  %s577_s16 = sadd.s32 4294967294, %s753_s14   ;;  %s753_s14 = sphi %s781_s14, %s15_s14   ;;  %s749_s13 = sphi %s779_s13, %s974_s13   ;;  %s745_s12 = sphi %s777_s12, %s973_s12   ;;  %s741_s11 = sphi %s775_s11, %s972_s11   ;;  %s737_s10 = sphi %s773_s10, %s971_s10   ;;  %s733_s9 = sphi %s771_s9, %s970_s9  }
   0x5   : > { %s27_s17 = sadd.s32 1, %s749_s13  ;;  %s90_s18 = sadd.s32 1, %s741_s11 }
   0x6   : > { %p29_p0 = scmp.ge.s32.totalorder %s27_s17, 2  ;;  %p100_p1 = scmp.ne.s32.totalorder %s741_s11, %s737_s10 }
   0x7   : > { %p101_p2 = scmp.eq.s32.totalorder %s576_s15, 1  ;;  %p106_p3 = scmp.ne.s32.totalorder %s737_s10, %s733_s9 }
   0x8   : > { %s976_s17 = smov (%p29_p0, %s27_s17), 0  ;;  %p107_p5 = scmp.eq.s32.totalorder %s577_s16, 1 }
   0x9   : > { %p811_p4 = por %p101_p2, %p100_p1  ;;  %s85_s20 = ssub.s32 %s749_s13, %s976_s17 }
   0xa   : > { %p580_p6 = scmp.ge.s32.totalorder %s753_s14, 1  ;;  %p88_p7 = scmp.eq.s32.totalorder %s85_s20, 0 }
   0xb   : > { %p818_p8 = por %p107_p5, %p106_p3  ;;  %p146_p9 = scmp.lt.s32.totalorder %s753_s14, 3 }
   0xc   : > { %s824_s22 = scalar_select %p88_p7, %s741_s11, %s90_s18  }
   0xd   : > { %p147_p10 = pnand %p580_p6, %p146_p9 }
   0xe   : > { %p178_p11 = scmp.lt.s32.totalorder (!%p147_p10), %s745_s12, 1  ;;  %s174_s4 = sand.u32 (!%p147_p10), 1, %s737_s10  }
   0xf   : > { %150 = sbr.rel (%p147_p10) target bundleno = 354 (0x162), region = 28  ;;  %s581_s5 = sshll.u32 (!%p147_p10), %s174_s4, 3 }
  0x10   : > { %s612_s6 = sshll.u32 (!%p147_p10), %s745_s12, 3  ;;  %s176_s16 = scalar_lea.vmem (!%p147_p10), [#allocation2], %s581_s5 }
  0x11   : > { %s483_s15 = scalar_lea.hbm (!%p147_p10), %s963_s2, %s612_s6  ;;  %s485_s18 = sshll.u32 (!%p147_p10), %s176_s16, 4  ;;  %s486_s18 = int_to_ptr.vmem [resolvable:$true] %s485_s18 }
  0x12   : > { %s487_s20 = sshll.u32 (!%p147_p10), %s483_s15, 4  ;;  %s488_s20 = int_to_ptr.hbm [resolvable:$true] %s487_s20 }
  0x14   : > { %s828_s23 = scalar_select %p178_p11, %s745_s12, 1  ;;  %v199_v1 = vlaneseq  ;;  %vm249_vm8 = vcmask 130048  }
  0x16   : > { %s610_s24 = sshll.u32 %s828_s23, 2  ;;  %v835_v4 = vshrl.u32 %v199_v1, 7  ;;  %s611_s28 = sshll.u32 %s828_s23, 6 }
  0x17   : > { %s185_s27 = scalar_lea.vmem %s961_s0, %s610_s24  ;;  %s861_s3 = scalar_lea.vmem %s962_s1, %s611_s28 }
  0x18   : > { %v193_v0 = vld [vmem:[%s185_s27] sm:$0xf]  ;;  %v842_v8 = vadd.s32 8, %v835_v4  ;;  %v246_v34 = vld [vmem:[%s861_s3 + $0x28] sm:$0xff]  ;;  %v247_v37 = vld [vmem:[%s861_s3 + $0x30] sm:$0xff]  ;;  %s470_s23 = scalar_lea.sflag [#allocation3], %s174_s4 }
  0x19   : > { %v194_v2 = vmax.f32 %v193_v0, 0.0  ;;  %v241_v33 = vld [vmem:[%s861_s3] sm:$0xff]  ;;  %v242_v36 = vld [vmem:[%s861_s3 + $0x8] sm:$0xff]  ;;  %v243_v38 = vld [vmem:[%s861_s3 + $0x10] sm:$0xff]  ;;  %s689_s24 = sshra.s32 %s488_s20, 4  ;;  %s695_s27 = scalar_lea.hbm %s963_s2, 16  ;;  %s690_s24 = int_to_ptr.hbm [resolvable:$true] %s689_s24 }
  0x1a   : > { %v248_v39 = vld [vmem:[%s861_s3 + $0x38] sm:$0xff]  ;;  %v245_v41 = vld [vmem:[%s861_s3 + $0x20] sm:$0xff]  ;;  %s691_s12 = scalar_lea.hbm %s690_s24, 8  ;;  %p696_p1 = scmp.lt.s32.totalorder %s690_s24, %s963_s2 }
  0x1b   : > { %v195_v3 = vmin.f32 %v194_v2, 15.0  ;;  %v244_v40 = vld [vmem:[%s861_s3 + $0x18] sm:$0xff]  ;;  %p692_p12 = scmp.ne.s32.totalorder %s690_s24, %s691_s12  ;;  %p697_p2 = scmp.lt.s32.totalorder %s695_s27, %s691_s12 }
  0x1d   : > { %v196_v5 = vfloor.f32 %v195_v3  ;;  %p693_p13 = pnand %p692_p12, %p811_p4  ;;  %p698_p3 = por %p697_p2, %p696_p1 }
  0x1f   : > { %v837_v6 = vsub.f32 %v195_v3, %v196_v5  ;;  %v839_v7 = vcvt.f32.s32 %v196_v5  ;;  %p694_p0 = pneg %p693_p13 }
  0x21   : > { %v202_v9 = vperm.slane %v839_v7, 0  ;;  %v846_v10 = vsub.f32 1.0, %v837_v6  ;;  %v220_v11 = vperm.slane %v837_v6, 0  ;;  %v203_v12 = vperm.slane %v839_v7, 2  ;;  %p699_p5 = pnand %p698_p3, %p694_p0 }
  0x22   : > { %v221_v13 = vperm.slane %v837_v6, 2  ;;  %v356_v44 = vperm.slane %v839_v7, 1  ;;  %v357_v46 = vperm.slane %v839_v7, 3  ;;  %v372_v53 = vperm.slane %v837_v6, 1 }
  0x23   : > { %v204_v14 = vperm.slane %v202_v9, 0  ;;  %v231_v15 = vperm.slane %v846_v10, 0  ;;  %v205_v16 = vperm.slane %v203_v12, 0  ;;  %v224_v17 = vperm.slane %v220_v11, 0 }
  0x24   : > { %v225_v18 = vperm.slane %v221_v13, 0  ;;  %v232_v19 = vperm.slane %v846_v10, 2  ;;  %v358_v50 = vperm.slane %v356_v44, 1  ;;  %v359_v51 = vperm.slane %v357_v46, 1 }
  0x25   : > { %v208_v20 = vsub.s32 %v842_v8, %v204_v14  ;;  %v235_v21 = vperm.slane %v231_v15, 0  ;;  %v209_v22 = vsub.s32 %v842_v8, %v205_v16  ;;  %v206_v23 = vsub.s32 %v835_v4, %v204_v14 }
  0x26   : > { %v236_v24 = vperm.slane %v232_v19, 0  ;;  %v207_v25 = vsub.s32 %v835_v4, %v205_v16  ;;  %v362_v52 = vsub.s32 %v842_v8, %v358_v50  ;;  %v363_v54 = vsub.s32 %v842_v8, %v359_v51 }
  0x27   : > { %vm212_vm0 = vcmp.eq.s32.totalorder %v208_v20, 0  ;;  %vm217_vm1 = vcmp.eq.s32.totalorder %v208_v20, 1  ;;  %vm213_vm2 = vcmp.eq.s32.totalorder %v209_v22, 0  ;;  %vm218_vm3 = vcmp.eq.s32.totalorder %v209_v22, 1 }
  0x28   : > { %v228_v26 = vsel %vm217_vm1, %v224_v17, 0.0  ;;  %v229_v27 = vsel %vm218_vm3, %v225_v18, 0.0  ;;  %vm210_vm4 = vcmp.eq.s32.totalorder %v206_v23, 0  ;;  %vm215_vm5 = vcmp.eq.s32.totalorder %v206_v23, 1 }
  0x29   : > { %v239_v28 = vsel %vm212_vm0, %v235_v21, %v228_v26  ;;  %v240_v29 = vsel %vm213_vm2, %v236_v24, %v229_v27  ;;  %v226_v30 = vsel %vm215_vm5, %v224_v17, 0.0  ;;  %vm211_vm6 = vcmp.eq.s32.totalorder %v207_v25, 0 }
  0x2a   : > { %288 = vmatpush.msra.mxu0 %v239_v28  ;;  %613 = vmatpush.msra.mxu2 %v239_v28  ;;  %v237_v31 = vsel %vm210_vm4, %v235_v21, %v226_v30  ;;  %vm216_vm7 = vcmp.eq.s32.totalorder %v207_v25, 1  ;;  %v360_v55 = vsub.s32 %v835_v4, %v358_v50  ;;  %v373_v56 = vperm.slane %v837_v6, 3 }
  0x2b   : > { %329 = vmatpush.msra.mxu1 %v240_v29  ;;  %615 = vmatpush.msra.mxu3 %v240_v29  ;;  %v227_v32 = vsel %vm216_vm7, %v225_v18, 0.0  ;;  %v361_v58 = vsub.s32 %v835_v4, %v359_v51  ;;  %v382_v60 = vperm.slane %v846_v10, 1  ;;  %vm370_vm9 = vcmp.eq.s32.totalorder %v362_v52, 1 }
  0x2c   : > { %289 = vmatpush.msra.mxu0 %v237_v31  ;;  %614 = vmatpush.msra.mxu2 %v237_v31  ;;  %v238_v35 = vsel %vm211_vm6, %v236_v24, %v227_v32  ;;  %v376_v62 = vperm.slane %v372_v53, 1  ;;  %v383_v63 = vperm.slane %v846_v10, 3  ;;  %vm371_vm10 = vcmp.eq.s32.totalorder %v363_v54, 1 }
  0x2d   : > { %330 = vmatpush.msra.mxu1 %v238_v35  ;;  %616 = vmatpush.msra.mxu3 %v238_v35  ;;  %vm368_vm11 = vcmp.eq.s32.totalorder %v360_v55, 1  ;;  %v377_v2 = vperm.slane %v373_v56, 1  ;;  %vm369_vm12 = vcmp.eq.s32.totalorder %v361_v58, 1  ;;  %vm366_vm13 = vcmp.eq.s32.totalorder %v362_v52, 0 }
  0x2e   : > { %586 = vmatmul.msk.f32.vlgmr.msra.gmra.mxu0 %vm249_vm8, %v241_v33  ;;  %591 = vmatmul.msk.f32.vlgmr.msra.gmra.mxu2 %vm249_vm8, %v246_v34  ;;  %v380_v3 = vsel %vm370_vm9, %v376_v62, 0.0  ;;  %v386_v5 = vperm.slane %v382_v60, 1  ;;  %vm367_vm14 = vcmp.eq.s32.totalorder %v363_v54, 0  ;;  %vm364_vm15 = vcmp.eq.s32.totalorder %v360_v55, 0 }
  0x2f   : > { %594 = vmatmul.msk.f32.vlgmr.msra.gmra.mxu1 %vm249_vm8, %v241_v33  ;;  %599 = vmatmul.msk.f32.vlgmr.msra.gmra.mxu3 %vm249_vm8, %v246_v34  ;;  %v381_v6 = vsel %vm371_vm10, %v377_v2, 0.0  ;;  %v378_v7 = vsel %vm368_vm11, %v376_v62, 0.0  ;;  %v387_v8 = vperm.slane %v383_v63, 1  ;;  %vm365_vm0 = vcmp.eq.s32.totalorder %v361_v58, 0 }
  0x30   : > { %v379_v9 = vsel %vm369_vm12, %v377_v2, 0.0  ;;  %v390_v11 = vsel %vm366_vm13, %v386_v5, %v380_v3  ;;  %v388_v15 = vsel %vm364_vm15, %v386_v5, %v378_v7  ;;  %v412_v24 = vadd.s32 1, %v835_v4 }
  0x31   : > { %v391_v13 = vsel %vm367_vm14, %v387_v8, %v381_v6  ;;  %v389_v18 = vsel %vm365_vm0, %v387_v8, %v379_v9  ;;  %v409_v26 = vand.u32 127, %v199_v1  ;;  %v410_v27 = vmul.u32 16, %v835_v4 }
  0x32   : > { %v413_v28 = vmul.u32 16, %v412_v24  ;;  %vm418_vm4 = vcmask 523264   ;;  %vm465_vm5 = vcmask 1043456  }
  0x33   : > { %vm908_vm1 = vcmp.ge.s32.totalorder %v409_v26, %v410_v27 }
  0x34   : > { %vm912_vm2 = vcmp.lt.s32.totalorder %v409_v26, %v413_v28 }
  0x35   : > { %vm415_vm3 = vmand %vm908_vm1, %vm912_vm2 }
  0x36   : > { %587 = vmatmul.msk.f32.gmra.mxu0 %vm249_vm8, %v242_v36  ;;  %592 = vmatmul.msk.f32.gmra.mxu2 %vm249_vm8, %v247_v37 }
  0x37   : > { %595 = vmatmul.msk.f32.gmra.mxu1 %vm249_vm8, %v242_v36  ;;  %600 = vmatmul.msk.f32.gmra.mxu3 %vm249_vm8, %v247_v37 }
  0x3e   : > { %588 = vmatmul.msk.f32.gmra.mxu0 %vm249_vm8, %v243_v38  ;;  %593 = vmatmul.msk.f32.gmra.mxu2 %vm249_vm8, %v248_v39 }
  0x3f   : > { %596 = vmatmul.msk.f32.gmra.mxu1 %vm249_vm8, %v243_v38  ;;  %601 = vmatmul.msk.f32.gmra.mxu3 %vm249_vm8, %v248_v39 }
  0x46   : > { %589 = vmatmul.msk.f32.gmra.mxu0 %vm249_vm8, %v244_v40 }
  0x47   : > { %597 = vmatmul.msk.f32.gmra.mxu1 %vm249_vm8, %v244_v40  ;;  %v755_v40 = vmov 0.0  }
  0x4e   : > { %590 = vmatmul.msk.f32.gmra.mxu0 %vm249_vm8, %v245_v41 }
  0x4f   : > { %598 = vmatmul.msk.f32.gmra.mxu1 %vm249_vm8, %v245_v41  ;;  %v602_v41 = vsel %vm415_vm3, 1.0, %v755_v40 }
  0xab   : > { %v887_v42 = vpop.f32.mrf.mxu0 }
  0xac   : > { %v889_v43 = vpop.f32.mrf.mxu1  ;;  %v392_v38 = vmul.f32 %v388_v15, %v887_v42 }
  0xad   : > { %v393_v39 = vmul.f32 %v389_v18, %v889_v43 }
  0xb1   : > { %v306_v45 = vpop.f32.mrf.mxu2 }
  0xb2   : > { %v347_v47 = vpop.f32.mrf.mxu3  ;;  %v402_v22 = vmul.f32 %v390_v11, %v306_v45 }
  0xb3   : > { %v893_v48 = vpop.f32.mrf.mxu0  ;;  %v403_v23 = vmul.f32 %v391_v13, %v347_v47 }
  0xb4   : > { %v895_v49 = vpop.f32.mrf.mxu1  ;;  %v394_v4 = vmul.f32 %v390_v11, %v893_v48 }
  0xb5   : > { %v395_v37 = vmul.f32 %v391_v13, %v895_v49 }
  0xb9   : > { %v309_v57 = vpop.f32.mrf.mxu2 }
  0xba   : > { %v350_v59 = vpop.f32.mrf.mxu3  ;;  %v404_v19 = vmul.f32 %v388_v15, %v309_v57 }
  0xbb   : > { %v297_v61 = vpop.f32.mrf.mxu0  ;;  %v405_v21 = vmul.f32 %v389_v18, %v350_v59 }
  0xbc   : > { %v338_v0 = vpop.f32.mrf.mxu1  ;;  %v396_v36 = vmul.f32 %v388_v15, %v297_v61 }
  0xbd   : > { %v397_v1 = vmul.f32 %v389_v18, %v338_v0 }
  0xc1   : > { %v312_v12 = vpop.f32.mrf.mxu2 }
  0xc2   : > { %v406_v14 = vmul.f32 %v390_v11, %v312_v12  ;;  %v353_v10 = vpop.f32.mrf.mxu3 }
  0xc3   : > { %v407_v16 = vmul.f32 %v391_v13, %v353_v10  ;;  %v300_v17 = vpop.f32.mrf.mxu0 }
  0xc4   : > { %v341_v20 = vpop.f32.mrf.mxu1  ;;  %430 = vmatpush.msrb.mxu2 %v406_v14  ;;  %v398_v32 = vmul.f32 %v390_v11, %v300_v17 }
  0xc5   : > { %450 = vmatpush.msrb.mxu3 %v407_v16  ;;  %v399_v33 = vmul.f32 %v391_v13, %v341_v20 }
  0xc6   : > { %431 = vmatpush.msrb.mxu2 %v404_v19 }
  0xc7   : > { %451 = vmatpush.msrb.mxu3 %v405_v21 }
  0xc8   : > { %432 = vmatpush.msrb.mxu2 %v402_v22 }
  0xc9   : > { %452 = vmatpush.msrb.mxu3 %v403_v23 }
  0xcb   : > { %v303_v25 = vpop.f32.mrf.mxu0 }
  0xcc   : > { %v400_v29 = vmul.f32 %v388_v15, %v303_v25  ;;  %v344_v30 = vpop.f32.mrf.mxu1 }
  0xcd   : > { %v401_v31 = vmul.f32 %v389_v18, %v344_v30 }
  0xce   : > { %433 = vmatpush.msrb.mxu2 %v400_v29 }
  0xcf   : > { %453 = vmatpush.msrb.mxu3 %v401_v31 }
  0xd0   : > { %434 = vmatpush.msrb.mxu2 %v398_v32 }
  0xd1   : > { %454 = vmatpush.msrb.mxu3 %v399_v33 }
  0xd2   : > { %435 = vmatpush.msrb.mxu2 %v396_v36 }
  0xd3   : > { %455 = vmatpush.msrb.mxu3 %v397_v1 }
  0xd4   : > { %436 = vmatpush.msrb.mxu2 %v394_v4 }
  0xd5   : > { %456 = vmatpush.msrb.mxu3 %v395_v37 }
  0xd6   : > { %437 = vmatpush.msrb.mxu2 %v392_v38 }
  0xd7   : > { %457 = vmatpush.msrb.mxu3 %v393_v39  ;;  %603 = vmatmul.msk.f32.vlgmr.msrb.gmra.mxu2 %vm418_vm4, %v602_v41 }
  0xd8   : > { %604 = vmatmul.msk.f32.vlgmr.msrb.gmra.mxu3 %vm418_vm4, %v602_v41 }
 0x15a   : > { %v439_v43 = vpop.f32.mrf.mxu2 }
 0x15b   : > { %v459_v42 = vpop.f32.mrf.mxu3 }
 0x15c   : > { %v464_v44 = vrot.slane %v459_v42, 4 }
 0x15e   : > { %v466_v45 = vsel %vm465_vm5, %v439_v43, %v464_v44 }
 0x15f   : > { %468 = vst [vmem:[%s176_s16] sm:$0xff] %v466_v45 }
 0x160   : > { %702 = shalt.err (!%p699_p5)
}
 0x161   : > { %619 = dma.vmem_to_hbm [thread:$0]  (%p811_p4), %s486_s18, 128, %s488_s20, %s470_s23  }
 0x162 PF: > { %p625_p6 = scmp.ge.s32.totalorder %s753_s14, 2  ;;  %s499_s30 = sand.u32 1, %s733_s9  }
 0x163   : > { %s500_s3 = scalar_lea.sflag [#allocation3], %s499_s30 }
 0x164   : > { %p622_p7 = pnand %p625_p6, %p818_p8 }
 0x166   : > { %p623_p9 = pneg %p622_p7 }
 0x168   : > { %728 = dma.done.wait (%p623_p9), %s500_s3, 128  }
 0x169   : > { %730 = vsyncadd (%p623_p9), %s500_s3, 4294967168  ;;  %s15_s14 = sadd.s32 1, %s753_s14   ;;  %s970_s9 = smov %s737_s10 }
 0x16a   : > { %p12_p10 = scmp.ge.s32.totalorder %s15_s14, 4   ;;  %s971_s10 = smov %s741_s11 }
 0x16b   : > { %s972_s11 = smov %s824_s22  ;;  %s973_s12 = smov %s749_s13 }
 0x16c   : > { %s974_s13 = smov %s976_s17  ;;  %14 = sbr.rel (!%p12_p10) target bundleno = 4 (0x4), region = 66 }
 0x171   :  { %506 = vsyncpa [#allocation3], 1 }
 0x172   :  { %508 = vsyncpa [#allocation3 + $0x1], 1 }

</bundles_post_ra>
